<compile_context>
chip_gen: v7x
topology: tpu7x:2x2x1
jax: 0.10.0
libtpu: 0.0.40
codegen_flags: <defaults>
</compile_context>

<pallas_src>
import functools

import jax
import jax.numpy as jnp
from jax import lax
from jax.experimental import pallas as pl
from jax.experimental.pallas import tpu as pltpu

_NEG_PAD = -1.0e9  # bias for padded class lanes -> exp() underflows to 0


# ----------------------------------------------------------------------------
# Kernel 1: detection head forward + per-step detection-loss partial +
#           fused vision mean-pool partial (b_tile images per grid step)
# ----------------------------------------------------------------------------
def _det_head_loss_kernel(hs_ref, q_ref, wch_ref, bch_ref, w2_ref, b2_ref,
                          tc_ref, tb_ref,
                          cls_ref, box_ref, attn_ref, vpool_ref, loss_ref,
                          *, c_pad, num_t, inv_bq, inv_bt, inv_p):
    hs = hs_ref[...]                                   # (bt, P, H) bf16
    q = q_ref[...]                                     # (Q, H)     bf16
    bt, _, H = hs.shape
    Q = q.shape[0]

    # ---- fused vision mean-pool partial (hs already resident in VMEM) ----
    vpool_ref[...] = jnp.sum(hs.astype(jnp.float32), axis=1, keepdims=True) * inv_p

    # ---- query attention (per-image, batched einsum) ----
    qb = jnp.broadcast_to(q, (bt, Q, H))
    scores = jnp.einsum('bqh,bph->bqp', qb, hs,
                        preferred_element_type=jnp.float32)          # (bt,Q,P)
    m = jnp.max(scores, axis=-1, keepdims=True)
    e = jnp.exp(scores - m)
    attn = e * pl.reciprocal(jnp.sum(e, axis=-1, keepdims=True))     # exact
    attn_ref[...] = attn.astype(attn_ref.dtype)

    attended = jnp.einsum('bqp,bph->bqh', attn.astype(hs.dtype), hs,
                          preferred_element_type=jnp.float32)        # (bt,Q,H)

    # ---- fused [class(128-pad) | bbox layer-1] matmul on flattened M dim ----
    att2d = attended.reshape(bt * Q, H).astype(wch_ref.dtype)
    fused = jnp.dot(att2d, wch_ref[...],
                    preferred_element_type=jnp.float32) + bch_ref[...]
    cls2d = fused[:, :c_pad]                        # lane-aligned slice
    h1 = jnp.maximum(fused[:, c_pad:], 0.0)         # starts at lane 128 (aligned)

    box2d = jax.nn.sigmoid(
        jnp.dot(h1.astype(w2_ref.dtype), w2_ref[...],
                preferred_element_type=jnp.float32) + b2_ref[...])   # (btQ,128)

    cls3 = cls2d.reshape(bt, Q, c_pad)
    box3 = box2d.reshape(bt, Q, box2d.shape[-1])
    cls_ref[...] = cls3.astype(cls_ref.dtype)
    box_ref[...] = box3.astype(box_ref.dtype)

    # ---- fused _compute_detection_loss (per-step partial, all f32) ----
    tgt = tc_ref[...]                                                # (bt,Q,1) i32
    mx = jnp.max(cls3, axis=-1, keepdims=True)
    lse = mx + jnp.log(jnp.sum(jnp.exp(cls3 - mx), axis=-1, keepdims=True))
    onehot = (lax.broadcasted_iota(jnp.int32, cls3.shape, 2) == tgt
              ).astype(jnp.float32)
    picked = jnp.sum(cls3 * onehot, axis=-1, keepdims=True)
    class_part = jnp.sum(lse - picked) * inv_bq

    # L1 box loss: padded lanes of box3 are exactly 0.5 == padded target lanes,
    # so the full-lane sum equals the real 4-coordinate sum (no lane slicing).
    diff = jnp.abs(box3[:, :num_t, :] - tb_ref[...])
    box_part = jnp.sum(diff) * inv_bt

    loss_ref[...] = jnp.full(loss_ref.shape, class_part + box_part,
                             dtype=loss_ref.dtype)


def _pick_batch_tile(batch, num_queries, target_rows=256, max_tile=8):
    # TODO(synk): also cap b_tile by a VMEM budget (b_tile*P*H*2 bytes,
    # double-buffered) at real Qwen2-VL sizes; target_rows=128 is enough on v5e.
    best = 1
    for t in range(1, min(batch, max_tile) + 1):
        if batch % t == 0:
            best = t
            if t * num_queries >= target_rows:
                break
    return best


def detection_head_and_loss(vision_features, params, tgt_classes, tgt_boxes):
    B, P, H = vision_features.shape
    Q = params["query_embed"].shape[0]
    C1 = params["wc"].shape[1]                       # num_classes + 1
    c_pad = ((C1 + 127) // 128) * 128                # lane-dense class width
    T = tgt_boxes.shape[1]
    num_t = min(Q, T)
    num_t_eff = max(num_t, 1)
    inv_bq = 1.0 / float(B * Q)
    inv_bt = (1.0 / float(B * num_t)) if num_t > 0 else 0.0

    b_tile = _pick_batch_tile(B, Q)
    n_steps = B // b_tile

    # --- wrapper glue: target prep + bf16 casts + padded/fused weights ---
    tc_full = jnp.zeros((B, Q), jnp.int32)
    if num_t > 0:
        tc_full = tc_full.at[:, :num_t].set(
            tgt_classes[:, :num_t].astype(jnp.int32) + 1)
    tc_full = tc_full[..., None]                                     # (B,Q,1)
    if num_t > 0:
        tb = tgt_boxes[:, :num_t].astype(jnp.float32)
    else:
        tb = jnp.zeros((B, 1, 4), jnp.float32)
    # pad target boxes with 0.5 (== sigmoid(0), value of padded pred lanes)
    tb_pad = jnp.pad(tb, ((0, 0), (0, 0), (0, 128 - 4)), constant_values=0.5)

    hs_bf = vision_features.astype(jnp.bfloat16)
    q_bf = params["query_embed"].astype(jnp.bfloat16)
    wc_pad = jnp.pad(params["wc"], ((0, 0), (0, c_pad - C1)))
    bc_pad = jnp.pad(params["bc"], ((0, 0), (0, c_pad - C1)),
                     constant_values=_NEG_PAD)
    wch = jnp.concatenate([wc_pad, params["w1"]], axis=1).astype(jnp.bfloat16)
    bch = jnp.concatenate([bc_pad, params["b1"]], axis=1).astype(jnp.float32)
    w2p = jnp.pad(params["w2"], ((0, 0), (0, 128 - 4))).astype(jnp.bfloat16)
    b2p = jnp.pad(params["b2"], ((0, 0), (0, 128 - 4))).astype(jnp.float32)

    kernel = functools.partial(_det_head_loss_kernel,
                               c_pad=c_pad, num_t=num_t_eff,
                               inv_bq=inv_bq, inv_bt=inv_bt,
                               inv_p=1.0 / float(P))

    def rep(shape):
        return pl.BlockSpec(shape, lambda b: (0,) * len(shape))

    cls_pad, box_pad, attn, vpool, loss_parts = pl.pallas_call(
        kernel,
        grid=(n_steps,),
        in_specs=[
            pl.BlockSpec((b_tile, P, H), lambda b: (b, 0, 0)),        # vision tile
            rep((Q, H)),                                              # queries
            rep((H, c_pad + H)), rep((1, c_pad + H)),                 # fused W, b
            rep((H, 128)), rep((1, 128)),                             # bbox layer 2
            pl.BlockSpec((b_tile, Q, 1), lambda b: (b, 0, 0)),        # tgt classes
            pl.BlockSpec((b_tile, num_t_eff, 128), lambda b: (b, 0, 0)),  # tgt boxes
        ],
        out_specs=(
            pl.BlockSpec((b_tile, Q, c_pad), lambda b: (b, 0, 0)),
            pl.BlockSpec((b_tile, Q, 128), lambda b: (b, 0, 0)),
            pl.BlockSpec((b_tile, Q, P), lambda b: (b, 0, 0)),
            pl.BlockSpec((b_tile, 1, H), lambda b: (b, 0, 0)),
            pl.BlockSpec((1, 1, 128), lambda b: (b, 0, 0)),
        ),
        out_shape=(
            jax.ShapeDtypeStruct((B, Q, c_pad), jnp.float32),
            jax.ShapeDtypeStruct((B, Q, 128), jnp.float32),
            jax.ShapeDtypeStruct((B, Q, P), jnp.bfloat16),
            jax.ShapeDtypeStruct((B, 1, H), jnp.float32),
            jax.ShapeDtypeStruct((n_steps, 1, 128), jnp.float32),
        ),
        compiler_params=pltpu.CompilerParams(dimension_semantics=("parallel",)),
    )(hs_bf, q_bf, wch, bch, w2p, b2p, tc_full, tb_pad)

    pred_classes = cls_pad[:, :, :C1]
    pred_boxes = box_pad[:, :, :4]
    vision_emb = vpool[:, 0, :]
    det_loss = jnp.sum(loss_parts[:, 0, 0])
    return pred_classes, pred_boxes, attn, vision_emb, det_loss


# ----------------------------------------------------------------------------
# Kernel 2: streaming mean-pool over tokens (text branch)
#           grid = (batch "parallel", token tiles "arbitrary"), accumulator out
# ----------------------------------------------------------------------------
def _mean_pool_kernel(x_ref, out_ref, *, inv_n):
    t = pl.program_id(1)

    @pl.when(t == 0)
    def _():
        out_ref[...] = jnp.zeros_like(out_ref)

    out_ref[...] += jnp.sum(x_ref[...].astype(jnp.float32), axis=1, keepdims=True)

    @pl.when(t == pl.num_programs(1) - 1)
    def _():
        out_ref[...] = out_ref[...] * inv_n


def _pick_token_tile(n, pref=512):
    if n <= pref:
        return n
    best = None
    for t in range(8, pref + 1, 8):
        if n % t == 0:
            best = t
    return best if best is not None else n


def mean_pool(x, token_tile=512):
    B, N, H = x.shape
    x_bf = x.astype(jnp.bfloat16)                     # halve streamed bytes
    tile = _pick_token_tile(N, token_tile)
    n_tiles = N // tile
    kernel = functools.partial(_mean_pool_kernel, inv_n=1.0 / float(N))
    out = pl.pallas_call(
        kernel,
        grid=(B, n_tiles),
        in_specs=[pl.BlockSpec((1, tile, H), lambda b, t: (b, t, 0))],
        out_specs=pl.BlockSpec((1, 1, H), lambda b, t: (b, 0, 0)),
        out_shape=jax.ShapeDtypeStruct((B, 1, H), jnp.float32),
        compiler_params=pltpu.CompilerParams(
            dimension_semantics=("parallel", "arbitrary")),
    )(x_bf)
    return out[:, 0, :]


# ----------------------------------------------------------------------------
# Contrastive finalize: tiny (B,H)x(H,B) normalize + similarity + CE.
# Done in plain JAX — nothing to pipeline, a pallas_call would only add
# launch/DMA overhead (per review).
# ----------------------------------------------------------------------------
def contrastive_loss_from_embeddings(v_emb, t_emb, temperature=0.07):
    v = v_emb * lax.rsqrt(jnp.maximum(jnp.sum(v_emb * v_emb, -1, keepdims=True), 1e-24))
    t = t_emb * lax.rsqrt(jnp.maximum(jnp.sum(t_emb * t_emb, -1, keepdims=True), 1e-24))
    sim = jnp.dot(v, t.T) / temperature
    logprobs = jax.nn.log_softmax(sim, axis=-1)
    return -jnp.mean(jnp.diagonal(logprobs))


# ----------------------------------------------------------------------------
# Multi-task forward (Pallas-backed replacement of MultiTaskQwen2VL.forward)
# ----------------------------------------------------------------------------
def multi_task_forward(vision_features, text_features, detection_targets, params,
                       det_loss_weight=0.5, contrastive_loss_weight=0.2,
                       base_loss=0.0):
    # TODO(synk): base Qwen2-VL language-model forward + SpanNERHead have no
    # standalone definition here; base_loss is taken as an input scalar and the
    # NER branch is omitted.
    pred_classes, pred_boxes, attn_weights, vision_emb, det_l = \
        detection_head_and_loss(vision_features, params,
                                detection_targets["classes"],
                                detection_targets["boxes"])
    text_emb = mean_pool(text_features)
    ctr_l = contrastive_loss_from_embeddings(vision_emb, text_emb)
    combined = base_loss + det_loss_weight * det_l + contrastive_loss_weight * ctr_l
    return {
        "loss": combined,
        "detection_loss": det_l,
        "contrastive_loss": ctr_l,
        "detection_predictions": {"classes": pred_classes, "boxes": pred_boxes},
        "attention_weights": attn_weights,
    }


# ----------------------------------------------------------------------------
# Deterministic parameter init (mirrors PercentageBasedDetectionHead.__init__)
# ----------------------------------------------------------------------------
def init_detection_head_params(key, hidden_size, num_classes, num_queries):
    ks = jax.random.split(key, 6)
    C1 = num_classes + 1
    scale = 0.02
    return {
        # nn.Embedding(num_queries, hidden_size)
        "query_embed": scale * jax.random.normal(ks[0], (num_queries, hidden_size), jnp.float32),
        # nn.Linear(hidden_size, num_classes + 1)  (stored as [in, out])
        "wc": scale * jax.random.normal(ks[1], (hidden_size, C1), jnp.float32),
        "bc": scale * jax.random.normal(ks[2], (1, C1), jnp.float32),
        # bbox_embed: Linear(H, H) -> ReLU -> Linear(H, 4)
        "w1": scale * jax.random.normal(ks[3], (hidden_size, hidden_size), jnp.float32),
        "b1": jnp.zeros((1, hidden_size), jnp.float32),
        "w2": scale * jax.random.normal(ks[4], (hidden_size, 4), jnp.float32),
        "b2": jnp.zeros((1, 4), jnp.float32),
    }


if __name__ == "__main__":
    # Small shapes consistent with the forward pass
    B, P, S, H = 2, 16, 8, 32          # batch, vision patches, text seq, hidden
    NUM_QUERIES = 8
    NUM_CLASSES = 5                    # object classes (module default 80, shrunk)
    NUM_TARGETS = 3                    # boxes per image

    key = jax.random.PRNGKey(0)
    k_vis, k_txt, k_cls, k_box, k_par = jax.random.split(key, 5)

    vision_features = jax.random.normal(k_vis, (B, P, H), jnp.float32)
    text_features = jax.random.normal(k_txt, (B, S, H), jnp.float32)
    detection_targets = {
        "classes": jax.random.randint(k_cls, (B, NUM_TARGETS), 0, NUM_CLASSES),
        "boxes": jax.random.uniform(k_box, (B, NUM_TARGETS, 4), jnp.float32),
    }
    params = init_detection_head_params(k_par, H, NUM_CLASSES, NUM_QUERIES)

    out = multi_task_forward(vision_features, text_features, detection_targets, params)
    jax.block_until_ready(out["loss"])
    jax.block_until_ready(out["detection_loss"])
    jax.block_until_ready(out["contrastive_loss"])
    jax.block_until_ready(out["detection_predictions"]["classes"])
    jax.block_until_ready(out["detection_predictions"]["boxes"])
    jax.block_until_ready(out["attention_weights"])
    print("KERNEL_OK")
</pallas_src>

<mosaic_0001>
module attributes {stable_mosaic.version = 11 : i64} {
  func.func @_det_head_loss_kernel(%arg0: i32, %arg1: memref<2x16x32xbf16, #tpu.memory_space<vmem>>, %arg2: memref<8x32xbf16, #tpu.memory_space<vmem>>, %arg3: memref<32x160xbf16, #tpu.memory_space<vmem>>, %arg4: memref<1x160xf32, #tpu.memory_space<vmem>>, %arg5: memref<32x128xbf16, #tpu.memory_space<vmem>>, %arg6: memref<1x128xf32, #tpu.memory_space<vmem>>, %arg7: memref<2x8x1xi32, #tpu.memory_space<vmem>>, %arg8: memref<2x3x128xf32, #tpu.memory_space<vmem>>, %arg9: memref<2x8x128xf32, #tpu.memory_space<vmem>>, %arg10: memref<2x8x128xf32, #tpu.memory_space<vmem>>, %arg11: memref<2x8x16xbf16, #tpu.memory_space<vmem>>, %arg12: memref<2x1x32xf32, #tpu.memory_space<vmem>>, %arg13: memref<1x1x128xf32, #tpu.memory_space<vmem>>) attributes {dimension_semantics = [#tpu.dimension_semantics<parallel>], iteration_bounds = array<i64: 1>, scalar_prefetch = 0 : i64, scratch_operands = 0 : i64, tpu.core_type = #tpu.core_type<tc>, window_params = [{transform_indices = @transform_0, window_bounds = array<i64: 2, 16, 32>}, {pipeline_mode = #tpu.pipeline_mode<synchronous>, transform_indices = @transform_1, window_bounds = array<i64: 8, 32>}, {pipeline_mode = #tpu.pipeline_mode<synchronous>, transform_indices = @transform_2, window_bounds = array<i64: 32, 160>}, {pipeline_mode = #tpu.pipeline_mode<synchronous>, transform_indices = @transform_3, window_bounds = array<i64: 1, 160>}, {pipeline_mode = #tpu.pipeline_mode<synchronous>, transform_indices = @transform_4, window_bounds = array<i64: 32, 128>}, {pipeline_mode = #tpu.pipeline_mode<synchronous>, transform_indices = @transform_5, window_bounds = array<i64: 1, 128>}, {transform_indices = @transform_6, window_bounds = array<i64: 2, 8, 1>}, {transform_indices = @transform_7, window_bounds = array<i64: 2, 3, 128>}, {transform_indices = @transform_8, window_bounds = array<i64: 2, 8, 128>}, {transform_indices = @transform_9, window_bounds = array<i64: 2, 8, 128>}, {transform_indices = @transform_10, window_bounds = array<i64: 2, 8, 16>}, {transform_indices = @transform_11, window_bounds = array<i64: 2, 1, 32>}, {transform_indices = @transform_12, window_bounds = array<i64: 1, 1, 128>}]} {
    %c0 = arith.constant 0 : index
    %c0_0 = arith.constant 0 : index
    %c0_1 = arith.constant 0 : index
    %0 = vector.load %arg1[%c0, %c0_0, %c0_1] : memref<2x16x32xbf16, #tpu.memory_space<vmem>>, vector<2x16x32xbf16>
    %c0_2 = arith.constant 0 : index
    %c0_3 = arith.constant 0 : index
    %1 = vector.load %arg2[%c0_2, %c0_3] : memref<8x32xbf16, #tpu.memory_space<vmem>>, vector<8x32xbf16>
    %2 = arith.extf %0 : vector<2x16x32xbf16> to vector<2x16x32xf32>
    %cst = arith.constant dense<0.000000e+00> : vector<2x32xf32>
    %3 = vector.multi_reduction <add>, %2, %cst [1] : vector<2x16x32xf32> to vector<2x32xf32>
    %4 = vector.shape_cast %3 : vector<2x32xf32> to vector<2x1x32xf32>
    %cst_4 = arith.constant 6.250000e-02 : f32
    %5 = vector.broadcast %cst_4 : f32 to vector<2x1x32xf32>
    %6 = arith.mulf %4, %5 : vector<2x1x32xf32>
    %c0_5 = arith.constant 0 : index
    %c0_6 = arith.constant 0 : index
    %c0_7 = arith.constant 0 : index
    %7 = vector.load %arg12[%c0_5, %c0_6, %c0_7] : memref<2x1x32xf32, #tpu.memory_space<vmem>>, vector<2x1x32xf32>
    tpu.vector_store %arg12[%c0_5, %c0_6, %c0_7], %6 {strides = array<i32>} : memref<2x1x32xf32, #tpu.memory_space<vmem>>, vector<2x1x32xf32>,
    %8 = vector.shape_cast %1 : vector<8x32xbf16> to vector<1x8x32xbf16>
    %9 = vector.broadcast %8 : vector<1x8x32xbf16> to vector<2x8x32xbf16>
    "tpu.trace_start"() <{level = 10 : i32, message = "bqh,bph->bqp"}> : () -> ()
    %cst_8 = arith.constant dense<0.000000e+00> : vector<2x8x16xf32>
    %10 = tpu.matmul %9, %0, %cst_8 {dimension_numbers = #tpu.dot_dimension_numbers<[2], [2], [1], [1], [0, 0, 0, 1, 1, 1], [0], [0]>} : vector<2x8x32xbf16>, vector<2x16x32xbf16>, vector<2x8x16xf32> -> vector<2x8x16xf32>
    "tpu.trace_stop"() : () -> ()
    %cst_9 = arith.constant dense<0xFF800000> : vector<2x8xf32>
    %11 = vector.multi_reduction <maximumf>, %10, %cst_9 [2] : vector<2x8x16xf32> to vector<2x8xf32>
    %12 = vector.shape_cast %11 : vector<2x8xf32> to vector<2x8x1xf32>
    %13 = vector.broadcast %12 : vector<2x8x1xf32> to vector<2x8x16xf32>
    %14 = arith.subf %10, %13 : vector<2x8x16xf32>
    %15 = math.exp %14 : vector<2x8x16xf32>
    %cst_10 = arith.constant dense<0.000000e+00> : vector<2x8xf32>
    %16 = vector.multi_reduction <add>, %15, %cst_10 [2] : vector<2x8x16xf32> to vector<2x8xf32>
    %17 = vector.shape_cast %16 : vector<2x8xf32> to vector<2x8x1xf32>
    %18 = tpu.reciprocal %17 : vector<2x8x1xf32> -> vector<2x8x1xf32>
    %19 = vector.broadcast %18 : vector<2x8x1xf32> to vector<2x8x16xf32>
    %20 = arith.mulf %15, %19 : vector<2x8x16xf32>
    %21 = arith.truncf %20 : vector<2x8x16xf32> to vector<2x8x16xbf16>
    %c0_11 = arith.constant 0 : index
    %c0_12 = arith.constant 0 : index
    %c0_13 = arith.constant 0 : index
    %22 = vector.load %arg11[%c0_11, %c0_12, %c0_13] : memref<2x8x16xbf16, #tpu.memory_space<vmem>>, vector<2x8x16xbf16>
    tpu.vector_store %arg11[%c0_11, %c0_12, %c0_13], %21 {strides = array<i32>} : memref<2x8x16xbf16, #tpu.memory_space<vmem>>, vector<2x8x16xbf16>,
    %23 = arith.truncf %20 : vector<2x8x16xf32> to vector<2x8x16xbf16>
    "tpu.trace_start"() <{level = 10 : i32, message = "bqp,bph->bqh"}> : () -> ()
    %cst_14 = arith.constant dense<0.000000e+00> : vector<2x8x32xf32>
    %24 = tpu.matmul %23, %0, %cst_14 {dimension_numbers = #tpu.dot_dimension_numbers<[2], [1], [1], [2], [0, 0, 0, 1, 1, 2], [0], [0]>} : vector<2x8x16xbf16>, vector<2x16x32xbf16>, vector<2x8x32xf32> -> vector<2x8x32xf32>
    "tpu.trace_stop"() : () -> ()
    %25 = vector.shape_cast %24 : vector<2x8x32xf32> to vector<16x32xf32>
    %26 = arith.truncf %25 : vector<16x32xf32> to vector<16x32xbf16>
    %c0_15 = arith.constant 0 : index
    %c0_16 = arith.constant 0 : index
    %27 = vector.load %arg3[%c0_15, %c0_16] : memref<32x160xbf16, #tpu.memory_space<vmem>>, vector<32x160xbf16>
    %cst_17 = arith.constant dense<0.000000e+00> : vector<16x160xf32>
    %28 = tpu.matmul %26, %27, %cst_17 {dimension_numbers = #tpu.dot_dimension_numbers<[1], [0], [0], [1], [0, 0, 1, 1], [], []>} : vector<16x32xbf16>, vector<32x160xbf16>, vector<16x160xf32> -> vector<16x160xf32>
    %c0_18 = arith.constant 0 : index
    %c0_19 = arith.constant 0 : index
    %29 = vector.load %arg4[%c0_18, %c0_19] : memref<1x160xf32, #tpu.memory_space<vmem>>, vector<1x160xf32>
    %30 = vector.broadcast %29 : vector<1x160xf32> to vector<16x160xf32>
    %31 = arith.addf %28, %30 : vector<16x160xf32>
    %32 = vector.extract_strided_slice %31 {offsets = [0, 0], sizes = [16, 128], strides = [1, 1]} : vector<16x160xf32> to vector<16x128xf32>
    %33 = vector.extract_strided_slice %31 {offsets = [0, 128], sizes = [16, 32], strides = [1, 1]} : vector<16x160xf32> to vector<16x32xf32>
    %cst_20 = arith.constant 0.000000e+00 : f32
    %34 = vector.broadcast %cst_20 : f32 to vector<16x32xf32>
    %35 = arith.maximumf %33, %34 : vector<16x32xf32>
    %36 = arith.truncf %35 : vector<16x32xf32> to vector<16x32xbf16>
    %c0_21 = arith.constant 0 : index
    %c0_22 = arith.constant 0 : index
    %37 = vector.load %arg5[%c0_21, %c0_22] : memref<32x128xbf16, #tpu.memory_space<vmem>>, vector<32x128xbf16>
    %cst_23 = arith.constant dense<0.000000e+00> : vector<16x128xf32>
    %38 = tpu.matmul %36, %37, %cst_23 {dimension_numbers = #tpu.dot_dimension_numbers<[1], [0], [0], [1], [0, 0, 1, 1], [], []>} : vector<16x32xbf16>, vector<32x128xbf16>, vector<16x128xf32> -> vector<16x128xf32>
    %c0_24 = arith.constant 0 : index
    %c0_25 = arith.constant 0 : index
    %39 = vector.load %arg6[%c0_24, %c0_25] : memref<1x128xf32, #tpu.memory_space<vmem>>, vector<1x128xf32>
    %40 = vector.broadcast %39 : vector<1x128xf32> to vector<16x128xf32>
    %41 = arith.addf %38, %40 : vector<16x128xf32>
    %42 = arith.negf %41 : vector<16x128xf32>
    %43 = math.exp %42 : vector<16x128xf32>
    %cst_26 = arith.constant 1.000000e+00 : f32
    %44 = vector.broadcast %cst_26 : f32 to vector<16x128xf32>
    %45 = arith.addf %44, %43 : vector<16x128xf32>
    %46 = arith.divf %44, %45 : vector<16x128xf32>
    %47 = vector.shape_cast %32 : vector<16x128xf32> to vector<2x8x128xf32>
    %48 = vector.shape_cast %46 : vector<16x128xf32> to vector<2x8x128xf32>
    %c0_27 = arith.constant 0 : index
    %c0_28 = arith.constant 0 : index
    %c0_29 = arith.constant 0 : index
    %49 = vector.load %arg9[%c0_27, %c0_28, %c0_29] : memref<2x8x128xf32, #tpu.memory_space<vmem>>, vector<2x8x128xf32>
    tpu.vector_store %arg9[%c0_27, %c0_28, %c0_29], %47 {strides = array<i32>} : memref<2x8x128xf32, #tpu.memory_space<vmem>>, vector<2x8x128xf32>,
    %c0_30 = arith.constant 0 : index
    %c0_31 = arith.constant 0 : index
    %c0_32 = arith.constant 0 : index
    %50 = vector.load %arg10[%c0_30, %c0_31, %c0_32] : memref<2x8x128xf32, #tpu.memory_space<vmem>>, vector<2x8x128xf32>
    tpu.vector_store %arg10[%c0_30, %c0_31, %c0_32], %48 {strides = array<i32>} : memref<2x8x128xf32, #tpu.memory_space<vmem>>, vector<2x8x128xf32>,
    %c0_33 = arith.constant 0 : index
    %c0_34 = arith.constant 0 : index
    %c0_35 = arith.constant 0 : index
    %51 = vector.load %arg7[%c0_33, %c0_34, %c0_35] : memref<2x8x1xi32, #tpu.memory_space<vmem>>, vector<2x8x1xi32>
    %cst_36 = arith.constant dense<0xFF800000> : vector<2x8xf32>
    %52 = vector.multi_reduction <maximumf>, %47, %cst_36 [2] : vector<2x8x128xf32> to vector<2x8xf32>
    %53 = vector.shape_cast %52 : vector<2x8xf32> to vector<2x8x1xf32>
    %54 = vector.broadcast %53 : vector<2x8x1xf32> to vector<2x8x128xf32>
    %55 = arith.subf %47, %54 : vector<2x8x128xf32>
    %56 = math.exp %55 : vector<2x8x128xf32>
    %cst_37 = arith.constant dense<0.000000e+00> : vector<2x8xf32>
    %57 = vector.multi_reduction <add>, %56, %cst_37 [2] : vector<2x8x128xf32> to vector<2x8xf32>
    %58 = vector.shape_cast %57 : vector<2x8xf32> to vector<2x8x1xf32>
    %59 = math.log %58 : vector<2x8x1xf32>
    %60 = arith.addf %53, %59 : vector<2x8x1xf32>
    %61 = tpu.iota {dimensions = array<i32: 2>} : vector<2x8x128xi32>
    %62 = vector.broadcast %51 : vector<2x8x1xi32> to vector<2x8x128xi32>
    %63 = arith.cmpi eq, %61, %62 : vector<2x8x128xi32>
    %64 = arith.extui %63 : vector<2x8x128xi1> to vector<2x8x128xi32>
    %65 = arith.sitofp %64 : vector<2x8x128xi32> to vector<2x8x128xf32>
    %66 = arith.mulf %47, %65 : vector<2x8x128xf32>
    %cst_38 = arith.constant dense<0.000000e+00> : vector<2x8xf32>
    %67 = vector.multi_reduction <add>, %66, %cst_38 [2] : vector<2x8x128xf32> to vector<2x8xf32>
    %68 = vector.shape_cast %67 : vector<2x8xf32> to vector<2x8x1xf32>
    %69 = arith.subf %60, %68 : vector<2x8x1xf32>
    %70 = vector.shape_cast %69 : vector<2x8x1xf32> to vector<1x2x8x1xf32>
    %cst_39 = arith.constant dense<0.000000e+00> : vector<1xf32>
    %71 = vector.multi_reduction <add>, %70, %cst_39 [1, 2, 3] : vector<1x2x8x1xf32> to vector<1xf32>
    %72 = vector.shape_cast %71 : vector<1xf32> to vector<1x1x1x1xf32>
    %73 = vector.extract %72[0, 0, 0, 0] : f32 from vector<1x1x1x1xf32>
    %cst_40 = arith.constant 6.250000e-02 : f32
    %74 = arith.mulf %73, %cst_40 : f32
    %75 = vector.extract_strided_slice %48 {offsets = [0, 0, 0], sizes = [2, 3, 128], strides = [1, 1, 1]} : vector<2x8x128xf32> to vector<2x3x128xf32>
    %c0_41 = arith.constant 0 : index
    %c0_42 = arith.constant 0 : index
    %c0_43 = arith.constant 0 : index
    %76 = vector.load %arg8[%c0_41, %c0_42, %c0_43] : memref<2x3x128xf32, #tpu.memory_space<vmem>>, vector<2x3x128xf32>
    %77 = arith.subf %75, %76 : vector<2x3x128xf32>
    %78 = math.absf %77 : vector<2x3x128xf32>
    %79 = vector.shape_cast %78 : vector<2x3x128xf32> to vector<1x2x3x128xf32>
    %cst_44 = arith.constant dense<0.000000e+00> : vector<1xf32>
    %80 = vector.multi_reduction <add>, %79, %cst_44 [1, 2, 3] : vector<1x2x3x128xf32> to vector<1xf32>
    %81 = vector.shape_cast %80 : vector<1xf32> to vector<1x1x1x1xf32>
    %82 = vector.extract %81[0, 0, 0, 0] : f32 from vector<1x1x1x1xf32>
    %cst_45 = arith.constant 0.166666672 : f32
    %83 = arith.mulf %82, %cst_45 : f32
    %84 = arith.addf %74, %83 : f32
    %85 = vector.broadcast %84 : f32 to vector<1x1x128xf32>
    %c0_46 = arith.constant 0 : index
    %c0_47 = arith.constant 0 : index
    %c0_48 = arith.constant 0 : index
    %86 = vector.load %arg13[%c0_46, %c0_47, %c0_48] : memref<1x1x128xf32, #tpu.memory_space<vmem>>, vector<1x1x128xf32>
    tpu.vector_store %arg13[%c0_46, %c0_47, %c0_48], %85 {strides = array<i32>} : memref<1x1x128xf32, #tpu.memory_space<vmem>>, vector<1x1x128xf32>,
    return
  }
  func.func @transform_0(%arg0: i32) -> (i32, i32, i32) {
    %c0_i32 = arith.constant 0 : i32
    %c0_i32_0 = arith.constant 0 : i32
    %c0_i32_1 = arith.constant 0 : i32
    return %arg0, %c0_i32, %c0_i32_0 : i32, i32, i32
  }
  func.func @transform_1(%arg0: i32) -> (i32, i32) {
    %c0_i32 = arith.constant 0 : i32
    %c0_i32_0 = arith.constant 0 : i32
    %c0_i32_1 = arith.constant 0 : i32
    return %c0_i32, %c0_i32_0 : i32, i32
  }
  func.func @transform_2(%arg0: i32) -> (i32, i32) {
    %c0_i32 = arith.constant 0 : i32
    %c0_i32_0 = arith.constant 0 : i32
    %c0_i32_1 = arith.constant 0 : i32
    return %c0_i32, %c0_i32_0 : i32, i32
  }
  func.func @transform_3(%arg0: i32) -> (i32, i32) {
    %c0_i32 = arith.constant 0 : i32
    %c0_i32_0 = arith.constant 0 : i32
    %c0_i32_1 = arith.constant 0 : i32
    return %c0_i32, %c0_i32_0 : i32, i32
  }
  func.func @transform_4(%arg0: i32) -> (i32, i32) {
    %c0_i32 = arith.constant 0 : i32
    %c0_i32_0 = arith.constant 0 : i32
    %c0_i32_1 = arith.constant 0 : i32
    return %c0_i32, %c0_i32_0 : i32, i32
  }
  func.func @transform_5(%arg0: i32) -> (i32, i32) {
    %c0_i32 = arith.constant 0 : i32
    %c0_i32_0 = arith.constant 0 : i32
    %c0_i32_1 = arith.constant 0 : i32
    return %c0_i32, %c0_i32_0 : i32, i32
  }
  func.func @transform_6(%arg0: i32) -> (i32, i32, i32) {
    %c0_i32 = arith.constant 0 : i32
    %c0_i32_0 = arith.constant 0 : i32
    %c0_i32_1 = arith.constant 0 : i32
    return %arg0, %c0_i32, %c0_i32_0 : i32, i32, i32
  }
  func.func @transform_7(%arg0: i32) -> (i32, i32, i32) {
    %c0_i32 = arith.constant 0 : i32
    %c0_i32_0 = arith.constant 0 : i32
    %c0_i32_1 = arith.constant 0 : i32
    return %arg0, %c0_i32, %c0_i32_0 : i32, i32, i32
  }
  func.func @transform_8(%arg0: i32) -> (i32, i32, i32) {
    %c0_i32 = arith.constant 0 : i32
    %c0_i32_0 = arith.constant 0 : i32
    %c0_i32_1 = arith.constant 0 : i32
    return %arg0, %c0_i32, %c0_i32_0 : i32, i32, i32
  }
  func.func @transform_9(%arg0: i32) -> (i32, i32, i32) {
    %c0_i32 = arith.constant 0 : i32
    %c0_i32_0 = arith.constant 0 : i32
    %c0_i32_1 = arith.constant 0 : i32
    return %arg0, %c0_i32, %c0_i32_0 : i32, i32, i32
  }
  func.func @transform_10(%arg0: i32) -> (i32, i32, i32) {
    %c0_i32 = arith.constant 0 : i32
    %c0_i32_0 = arith.constant 0 : i32
    %c0_i32_1 = arith.constant 0 : i32
    return %arg0, %c0_i32, %c0_i32_0 : i32, i32, i32
  }
  func.func @transform_11(%arg0: i32) -> (i32, i32, i32) {
    %c0_i32 = arith.constant 0 : i32
    %c0_i32_0 = arith.constant 0 : i32
    %c0_i32_1 = arith.constant 0 : i32
    return %arg0, %c0_i32, %c0_i32_0 : i32, i32, i32
  }
  func.func @transform_12(%arg0: i32) -> (i32, i32, i32) {
    %c0_i32 = arith.constant 0 : i32
    %c0_i32_0 = arith.constant 0 : i32
    %c0_i32_1 = arith.constant 0 : i32
    return %arg0, %c0_i32, %c0_i32_0 : i32, i32, i32
  }
}

</mosaic_0001>

<bundles_post_ra>
// kernel: tpu_custom_call.1
= control target key start
LH: loop header
LB: loop body
LE: loop exit
PB: predicated region body
PF: predicated region fallthrough
CT: control target
= control target key end

     0   :  { %18 = vsyncpa [#allocation3], 0  ;;  %s1258_s0 = inlined_call_operand.hbm [shape: bf16[2,16,32], index: 0, kind: input, shape index: {}]   ;;  %s1259_s1 = inlined_call_operand.vmem [shape: bf16[8,32], index: 1, kind: input, shape index: {}]   ;;  %s1260_s2 = inlined_call_operand.vmem [shape: bf16[32,160], index: 2, kind: input, shape index: {}]   ;;  %s1261_s3 = inlined_call_operand.hbm [shape: f32[1,160], index: 3, kind: input, shape index: {}]   ;;  %s1262_s4 = inlined_call_operand.hbm [shape: bf16[32,128], index: 4, kind: input, shape index: {}]   ;;  %s1263_s5 = inlined_call_operand.vmem [shape: f32[1,128], index: 5, kind: input, shape index: {}]   ;;  %s1264_s6 = inlined_call_operand.vmem [shape: s32[2,8,1], index: 6, kind: input, shape index: {}]   ;;  %s1265_s7 = inlined_call_operand.vmem [shape: f32[2,3,128], index: 7, kind: input, shape index: {}]   ;;  %s1266_s8 = inlined_call_operand.hbm [shape: f32[2,8,128], index: 8, kind: output, shape index: {0}]   ;;  %s1267_s9 = inlined_call_operand.hbm [shape: f32[2,8,128], index: 9, kind: output, shape index: {1}]   ;;  %s1268_s10 = inlined_call_operand.hbm [shape: bf16[2,8,16], index: 10, kind: output, shape index: {2}]   ;;  %s1269_s11 = inlined_call_operand.hbm [shape: f32[2,1,32], index: 11, kind: output, shape index: {3}]   ;;  %s1270_s12 = inlined_call_operand.hbm [shape: f32[1,1,128], index: 12, kind: output, shape index: {4}]  }
   0x1   :  { %19 = vsyncpa [#allocation6], 0 }
   0x2   :  { %20 = vsyncpa [#allocation4], 0 }
   0x3   :  { %21 = vsyncpa [#allocation10], 0 }
   0x4   :  { %22 = vsyncpa [#allocation13], 0  ;;  %s960_s21 = smov [#allocation5]   ;;  %s961_s23 = smov [#allocation2]  }
   0x5   :  { %s45_s22 = sshll.u32 %s960_s21, 4  ;;  %s28_s24 = sshll.u32 %s961_s23, 4  ;;  %s46_s22 = int_to_ptr.vmem [resolvable:$true] %s45_s22  ;;  %s1042_s24 = int_to_ptr.vmem [resolvable:$true] %s28_s24 }
   0x6   :  { %s774_s27 = scalar_lea.hbm %s1261_s3, 32 }
   0x7   :  { %p775_p0 = scmp.ne.s32.totalorder %s1261_s3, %s774_s27  ;;  %p778_p1 = scmp.lt.u32.totalorder %s774_s27, %s1261_s3 }
   0x9   :  { %p780_p2 = pnand %p778_p1, %p775_p0 }
   0xb   :  { %783 = shalt.err (!%p780_p2)
}
   0xc   :  { %s784_s14 = scalar_lea.vmem %s46_s22, 32  ;;  %p789_p4 = scmp.lt.s32.totalorder %s46_s22, %s46_s22 }
   0xd   :  { %p785_p3 = scmp.ne.s32.totalorder %s46_s22, %s784_s14  ;;  %p790_p5 = scmp.lt.s32.totalorder %s784_s14, %s784_s14 }
   0xf   :  { %p791_p6 = por %p790_p5, %p789_p4 }
  0x11   :  { %p792_p7 = pnand %p791_p6, %p785_p3 }
  0x13   :  { %795 = shalt.err (!%p792_p7)
}
  0x14   :  { %48 = dma.hbm_to_vmem [thread:$0]  %s1261_s3, 32, %s46_s22, [#allocation6]  }
  0x15   :  { %s796_s19 = scalar_lea.hbm %s1258_s0, 256 }
  0x16   :  { %p797_p8 = scmp.ne.s32.totalorder %s1258_s0, %s796_s19  ;;  %p800_p9 = scmp.lt.u32.totalorder %s796_s19, %s1258_s0 }
  0x18   :  { %p802_p10 = pnand %p800_p9, %p797_p8 }
  0x1a   :  { %805 = shalt.err (!%p802_p10)
}
  0x1b   :  { %s806_s26 = scalar_lea.vmem %s1042_s24, 256  ;;  %p811_p12 = scmp.lt.s32.totalorder %s1042_s24, %s1042_s24 }
  0x1c   :  { %p807_p11 = scmp.ne.s32.totalorder %s1042_s24, %s806_s26  ;;  %p812_p13 = scmp.lt.s32.totalorder %s806_s26, %s806_s26 }
  0x1e   :  { %p813_p0 = por %p812_p13, %p811_p12 }
  0x20   :  { %p814_p1 = pnand %p813_p0, %p807_p11 }
  0x22   :  { %817 = shalt.err (!%p814_p1)
}
  0x23   :  { %s962_s3 = smov 64   ;;  %s963_s22 = smov 4  }
  0x24   :  { %34 = dma.hbm_to_vmem [thread:$0]  %s1258_s0, 256, %s1042_s24, [#allocation3], %s962_s3, %s962_s3, %s963_s22  }
  0x25   :  { %s964_s29 = smov [#allocation7]   ;;  %s818_s15 = scalar_lea.hbm %s1262_s4, 256 }
  0x26   :  { %s54_s30 = sshll.u32 %s964_s29, 4  ;;  %p819_p2 = scmp.ne.s32.totalorder %s1262_s4, %s818_s15  ;;  %s55_s30 = int_to_ptr.vmem [resolvable:$true] %s54_s30 }
  0x27   :  { %p822_p3 = scmp.lt.u32.totalorder %s818_s15, %s1262_s4 }
  0x29   :  { %p824_p4 = pnand %p822_p3, %p819_p2 }
  0x2b   :  { %827 = shalt.err (!%p824_p4)
}
  0x2c   :  { %s828_s20 = scalar_lea.vmem %s55_s30, 256  ;;  %p833_p6 = scmp.lt.s32.totalorder %s55_s30, %s55_s30 }
  0x2d   :  { %p829_p5 = scmp.ne.s32.totalorder %s55_s30, %s828_s20  ;;  %p834_p7 = scmp.lt.s32.totalorder %s828_s20, %s828_s20 }
  0x2f   :  { %p835_p8 = por %p834_p7, %p833_p6 }
  0x31   :  { %p836_p9 = pnand %p835_p8, %p829_p5 }
  0x33   :  { %839 = shalt.err (!%p836_p9)
}
  0x34   :  { %60 = dma.hbm_to_vmem [thread:$0]  %s1262_s4, 256, %s55_s30, [#allocation6], %s962_s3, %s962_s3, %s963_s22  }
  0x35   :  { %950 = dma.done.wait [#allocation3], 256  }
  0x36   :  { %951 = vsyncadd [#allocation3], 4294967040 }
  0x37   :  { %952 = dma.done.wait [#allocation6], 288  }
  0x38   :  { %953 = vsyncadd [#allocation6], 4294967008  ;;  %v965_v0 = vmov 0.0   ;;  %vm966_vm0 = vmmov 0   ;;  %v1097_v1 = vld [vmem:[#allocation2] sm:$0xff]   ;;  %vm86_vm1 = vcmask 261120   ;;  %v332_v50 = vlaneseq }
  0x39   :  { %683 = vmatprep.subr.bf16.mxu0 %v965_v0  ;;  %689 = vmatprep.subr.bf16.mxu1 %v965_v0  ;;  %v1099_v2 = vld [vmem:[#allocation2 + $0x8] sm:$0xff]   ;;  %v119_v3 = vsel %vm86_vm1, %v1097_v1, 0  ;;  %v81_v5 = vld [vmem:[%s1259_s1] sm:$0xf]  ;;  %vm209_vm2 = vcmask 130048   ;;  %vm234_vm3 = vcmask 125952  }
  0x3a   :  { %685 = vmatprep.mubr.msk.bf16.mxu0 %vm966_vm0, %v965_v0  ;;  %691 = vmatprep.mubr.msk.bf16.mxu1 %vm966_vm0, %v965_v0  ;;  %v167_v4 = vsel %vm86_vm1, %v1099_v2, 0  ;;  %v742_v26 = vld [vmem:[%s1260_s2 + $0x4] ss:$8 sps:$4 sm:$0xff]   ;;  %v740_v31 = vld [vmem:[%s1260_s2] ss:$8 sps:$4 sm:$0xff]   ;;  %v967_v38 = vmov 0  }
  0x3b   :  { %684 = vmatpush3.bf16.xpose.msra.mxu0 %v119_v3  ;;  %690 = vmatpush3.bf16.xpose.msra.mxu1 %v167_v4  ;;  %v745_v36 = vld [vmem:[%s1260_s2 + $0x14] ss:$8 sps:$4 sm:$0xff]   ;;  %v743_v37 = vld [vmem:[%s1260_s2 + $0x10] ss:$8 sps:$4 sm:$0xff]   ;;  %v333_v51 = vshrl.u32 %v332_v50, 7  ;;  %vm558_vm6 = vcmask 1042432  }
  0x3c   :  { %695 = vmatprep.subr.bf16.mxu0 %v965_v0  ;;  %701 = vmatprep.subr.bf16.mxu1 %v965_v0  ;;  %v746_v48 = vld [vmem:[#allocation7] sm:$0xff]   ;;  %v747_v49 = vld [vmem:[#allocation7 + $0x8] sm:$0xff]   ;;  %v330_v53 = vld [vmem:[#allocation5] sm:$0x3]  ;;  %vm538_vm7 = vcmask 7168   ;;  %vm107_vm8 = vcmask 253952  }
  0x3d   :  { %737 = vset.pattern.permute.xlu1 %v967_v38  ;;  %736 = vset.pattern.permute.xlu0 %v967_v38  ;;  %v334_v52 = vsub.s32 0, %v333_v51  ;;  %v338_v54 = vsub.s32 1, %v333_v51  ;;  %s969_s0 = smov [#allocation12]  }
  0x3e   :  { %s616_s24 = sshll.u32 %s969_s0, 4  ;;  %s1175_s24 = int_to_ptr.vmem [resolvable:$true] %s616_s24 }
  0x3f   :  { %v335_v55 = vrot.slane %v330_v53, %v334_v52  ;;  %v339_v56 = vrot.slane %v330_v53, %v338_v54 }
  0x42   :  { %686 = vmatmul.mubr.msk.bf16.vlgmr.msra.gmra.mrb[0].mxu0 %vm86_vm1, %v81_v5  ;;  %692 = vmatmul.mubr.msk.bf16.vlgmr.msra.gmra.mrb[0].mxu1 %vm86_vm1, %v81_v5 }
  0x43   :  { %696 = vmatpush3.bf16.msra.mxu0 %v1097_v1  ;;  %702 = vmatpush3.bf16.msra.mxu1 %v1099_v2 }
  0x44   :  { %697 = vmatprep.mubr.msk.bf16.mxu0 %vm966_vm0, %v965_v0  ;;  %703 = vmatprep.mubr.msk.bf16.mxu1 %vm966_vm0, %v965_v0 }
  0x45   :  { %707 = vmatprep.subr.bf16.mxu1 %v965_v0  ;;  %365 = vmatprep.subr.bf16.mxu0 %v742_v26 }
 0x115   :  { %v155_v6 = vpop.f32.mrb[0].mxu0  ;;  %v203_v8 = vpop.f32.mrb[0].mxu1 }
 0x116   :  { %v687_v7 = vpop.f32.mrb[1].mxu0  ;;  %v210_v9 = vsel %vm209_vm2, %v155_v6, -inf  ;;  %v693_v10 = vpop.f32.mrb[1].mxu1  ;;  %v213_v14 = vsel %vm209_vm2, %v203_v8, -inf }
 0x117   :  { %211 = vmax.xlane.f32.xlu0 %v210_v9  ;;  %v158_v11 = vpop.f32.mrb[2].mxu0  ;;  %v206_v13 = vpop.f32.mrb[2].mxu1  ;;  %v495_v7 = vld [vmem:[%s1264_s6 + $0x8] sm:$0xff] }
 0x118   :  { %v688_v12 = vpop.f32.mrb[3].mxu0  ;;  %v694_v15 = vpop.f32.mrb[3].mxu1 }
 0x11b   :  { %214 = vmax.xlane.f32.xlu0 %v213_v14 }
 0x1a4   :  { %v212_v16 = vpop.xlane.xlu0 %211 }
 0x1a5   :  { %v216_v17 = vsub.f32 %v155_v6, %v212_v16  ;;  %v517_v16 = vand.u32 127, %v332_v50 }
 0x1a7   :  { %v218_v18 = vmul.f32 1.442695, %v216_v17 }
 0x1a8   :  { %v215_v19 = vpop.xlane.xlu0 %214 }
 0x1a9   :  { %750 = vpow2.f32 %v218_v18  ;;  %v217_v20 = vsub.f32 %v203_v8, %v215_v19  ;;  %v494_v8 = vld [vmem:[%s1264_s6] sm:$0xff] }
 0x1ab   :  { %v220_v21 = vmul.f32 1.442695, %v217_v20 }
 0x1ad   :  { %752 = vpow2.f32 %v220_v21 }
 0x1b3   :  { %v751_v22 = vpop.eup %750 }
 0x1b4   :  { %v222_v23 = vsel %vm209_vm2, %v751_v22, 0.0 }
 0x1b5   :  { %223 = vadd.xlane.f32.xlu1 %v222_v23 }
 0x1b7   :  { %v753_v24 = vpop.eup %752 }
 0x1b8   :  { %v225_v25 = vsel %vm209_vm2, %v753_v24, 0.0 }
 0x1b9   :  { %226 = vadd.xlane.f32.xlu1 %v225_v25 }
 0x242   :  { %v224_v27 = vpop.xlane.xlu1 %223 }
 0x243   :  { %754 = vrcp.f32 %v224_v27 }
 0x246   :  { %v227_v28 = vpop.xlane.xlu1 %226 }
 0x247   :  { %756 = vrcp.f32 %v227_v28 }
 0x24d   :  { %v755_v29 = vpop.eup %754 }
 0x24e   :  { %v230_v30 = vmul.f32 %v755_v29, %v751_v22 }
 0x250   :  { %v232_v32 = vpack.c.bf16 %v230_v30, %v230_v30 }
 0x251   :  { %v757_v33 = vpop.eup %756 }
 0x252   :  { %v231_v34 = vmul.f32 %v757_v33, %v753_v24  ;;  %698 = vmatmul.mubr.msk.bf16.vlgmr.msra.gmra.mrb[4].mxu0 %vm209_vm2, %v232_v32  ;;  %235 = vst.msk [vmem:[#allocation11] sm:$0xf] %vm234_vm3, %v232_v32  ;;  %v664_v24 = vld [vmem:[%s1263_s5] ss:$0 sm:$0xff] }
 0x253   :  { %366 = vmatpush1.bf16.msra.mxu0 %v740_v31  ;;  %397 = vmatprep.mubr.bf16.mxu0 %v967_v38  ;;  %v553_v38 = vld [vmem:[%s1265_s7 + $0x4] sm:$0x7] }
 0x254   :  { %v233_v35 = vpack.c.bf16 %v231_v34, %v231_v34  ;;  %367 = vmatprep.subr.bf16.mxu0 %v745_v36  ;;  %v552_v36 = vld [vmem:[%s1265_s7] sm:$0x7]  ;;  %s968_s7 = smov [#allocation9]  }
 0x255   :  { %s592_s20 = sshll.u32 %s968_s7, 4  ;;  %s593_s20 = int_to_ptr.vmem [resolvable:$true] %s592_s20 }
 0x256   :  { %704 = vmatmul.mubr.msk.bf16.vlgmr.msra.gmra.mrb[4].mxu1 %vm209_vm2, %v233_v35  ;;  %236 = vst.msk [vmem:[#allocation11 + $0x4] sm:$0xf] %vm234_vm3, %v233_v35  ;;  %s840_s4 = scalar_lea.vmem %s593_s20, 256  ;;  %p845_p11 = scmp.lt.s32.totalorder %s593_s20, %s593_s20 }
 0x257   :  { %711 = vmatprep.mubr.msk.bf16.mxu1 %vm966_vm0, %v965_v0  ;;  %368 = vmatpush1.bf16.msra.mxu0 %v743_v37  ;;  %p841_p10 = scmp.ne.s32.totalorder %s593_s20, %s840_s4  ;;  %p846_p12 = scmp.lt.s32.totalorder %s840_s4, %s840_s4 }
 0x258   :  { %708 = vmatpush3.bf16.msra.mxu1 %v746_v48 }
 0x259   :  { %709 = vmatprep.subr.bf16.mxu1 %v965_v0  ;;  %p847_p13 = por %p846_p12, %p845_p11 }
 0x25b   :  { %p848_p0 = pnand %p847_p13, %p841_p10 }
 0x25c   :  { %710 = vmatpush3.bf16.msra.mxu1 %v747_v49 }
 0x325   :  { %v275_v39 = vpop.f32.mrb[4].mxu0 }
 0x326   :  { %v699_v40 = vpop.f32.mrb[5].mxu0 }
 0x327   :  { %v278_v41 = vpop.f32.mrb[6].mxu0 }
 0x328   :  { %v700_v42 = vpop.f32.mrb[7].mxu0 }
 0x329   :  { %v319_v43 = vpop.f32.mrb[4].mxu1 }
 0x32a   :  { %v325_v44 = vpack.c.bf16 %v319_v43, %v275_v39  ;;  %v705_v45 = vpop.f32.mrb[5].mxu1 }
 0x32b   :  { %v322_v46 = vpop.f32.mrb[6].mxu1 }
 0x32c   :  { %v706_v47 = vpop.f32.mrb[7].mxu1  ;;  %663 = vmatmul.mubr.msk.bf16.vlgmr.msra.gmra.mrb[8].mxu0 %vm86_vm1, %v325_v44 }
 0x3ff   :  { %v399_v57 = vpop.f32.mrb[8].mxu0 }
 0x400   :  { %v400_v58 = vadd.f32 %v399_v57, %v335_v55  ;;  %v401_v59 = vpop.f32.mrb[9].mxu0 }
 0x401   :  { %v402_v60 = vadd.f32 %v401_v59, %v339_v56  ;;  %v403_v61 = vpop.f32.mrb[10].mxu0 }
 0x402   :  { %490 = vst [vmem:[#allocation8] sm:$0xff] %v400_v58  ;;  %v404_v62 = vadd.f32 %v403_v61, %v335_v55  ;;  %v405_v63 = vpop.f32.mrb[11].mxu0  ;;  %496 = vmax.xlane.f32.xlu0 %v400_v58 }
 0x403   :  { %v406_v3 = vadd.f32 %v405_v63, %v339_v56  ;;  %v408_v4 = vmax.f32 %v402_v60, 0.0  ;;  %v83_v63 = vunpack.c.h.bf16 %v1097_v1 }
 0x404   :  { %491 = vst [vmem:[#allocation8 + $0x8] sm:$0xff] %v404_v62  ;;  %498 = vmax.xlane.f32.xlu1 %v404_v62 }
 0x405   :  { %v409_v5 = vmax.f32 %v406_v3, 0.0  ;;  %v84_v3 = vunpack.c.l.bf16 %v1099_v2 }
 0x407   :  { %v410_v6 = vpack.c.bf16 %v409_v5, %v408_v4  ;;  %v85_v4 = vunpack.c.h.bf16 %v1099_v2 }
 0x409   :  { %712 = vmatmul.mubr.msk.bf16.vlgmr.msra.gmra.mrb[8].mxu1 %vm86_vm1, %v410_v6  ;;  %v88_v6 = vsel %vm86_vm1, %v83_v63, 0.0 }
 0x415   :  { %522 = vperm.xlu1 %737, %v495_v7   ;;  %v96_v7 = vsel %vm86_vm1, %v84_v3, 0.0 }
 0x418   :  { %519 = vperm.xlu0 %736, %v494_v8   ;;  %v97_v8 = vsel %vm86_vm1, %v85_v4, 0.0 }
 0x48f   :  { %v1148_v9 = vpop.xlane.xlu0 %496 }
 0x490   :  { %v500_v10 = vsub.f32 %v400_v58, %v1148_v9 }
 0x491   :  { %v1151_v11 = vpop.xlane.xlu1 %498 }
 0x492   :  { %v502_v12 = vmul.f32 1.442695, %v500_v10  ;;  %v501_v13 = vsub.f32 %v404_v62, %v1151_v11  ;;  %v98_v10 = vadd.f32 %v97_v8, %v96_v7 }
 0x494   :  { %758 = vpow2.f32 %v502_v12  ;;  %v504_v14 = vmul.f32 1.442695, %v501_v13  ;;  %v99_v12 = vrot.slane %v98_v10, 4 }
 0x495   :  { %v523_v17 = vpop.permute.xlu1 %522 }
 0x496   :  { %760 = vpow2.f32 %v504_v14  ;;  %vm525_vm5 = vcmp.eq.s32.totalorder %v517_v16, %v523_v17  ;;  %v100_v14 = vadd.f32 %v99_v12, %v98_v10 }
 0x497   :  { %v520_v15 = vpop.permute.xlu0 %519  ;;  %v671_v22 = vsel %vm525_vm5, 1.0, %v965_v0 }
 0x498   :  { %vm524_vm4 = vcmp.eq.s32.totalorder %v517_v16, %v520_v15  ;;  %v531_v23 = vmul.f32 %v671_v22, %v404_v62  ;;  %v82_v62 = vunpack.c.l.bf16 %v1097_v1  ;;  %v101_v1 = vrot.slane %v100_v14, 2 }
 0x499   :  { %v670_v19 = vsel %vm524_vm4, 1.0, %v965_v0 }
 0x49a   :  { %v530_v21 = vmul.f32 %v670_v19, %v400_v58  ;;  %v87_v5 = vsel %vm86_vm1, %v82_v62, 0.0  ;;  %v102_v17 = vadd.f32 %v101_v1, %v100_v14 }
 0x49c   :  { %v103_v2 = vrot.slane %v102_v17, 1 }
 0x49e   :  { %v759_v18 = vpop.eup %758 }
 0x49f   :  { %506 = vadd.xlane.f32.xlu1 %v759_v18 }
 0x4a0   :  { %v761_v20 = vpop.eup %760 }
 0x4a1   :  { %508 = vadd.xlane.f32.xlu0 %v761_v20  ;;  %v104_v20 = vadd.f32 %v103_v2, %v102_v17 }
 0x4a3   :  { %532 = vadd.xlane.f32.xlu1 %v530_v21  ;;  %v106_v22 = vmul.f32 0.0625, %v104_v20 }
 0x4a5   :  { %109 = vst.msk [vmem:[#allocation12 + $0x1] sm:$0x1] %vm107_vm8, %v106_v22 }
 0x4a7   :  { %534 = vadd.xlane.f32.xlu1 %v531_v23 }
 0x4dc   :  { %v471_v25 = vpop.f32.mrb[8].mxu1 }
 0x4dd   :  { %v472_v26 = vadd.f32 %v664_v24, %v471_v25  ;;  %v713_v27 = vpop.f32.mrb[9].mxu1 }
 0x4de   :  { %v474_v28 = vpop.f32.mrb[10].mxu1 }
 0x4df   :  { %v668_v29 = vmul.f32 -1.442695, %v472_v26  ;;  %v475_v30 = vadd.f32 %v664_v24, %v474_v28  ;;  %v714_v31 = vpop.f32.mrb[11].mxu1 }
 0x4e1   :  { %762 = vpow2.f32 %v668_v29  ;;  %v669_v32 = vmul.f32 -1.442695, %v475_v30 }
 0x4e3   :  { %764 = vpow2.f32 %v669_v32 }
 0x4eb   :  { %v763_v33 = vpop.eup %762 }
 0x4ec   :  { %v484_v34 = vadd.f32 1.0, %v763_v33 }
 0x4ed   :  { %v765_v0 = vpop.eup %764 }
 0x4ee   :  { %766 = vrcp.f32 %v484_v34  ;;  %v485_v35 = vadd.f32 1.0, %v765_v0 }
 0x4f0   :  { %768 = vrcp.f32 %v485_v35 }
 0x4f8   :  { %v767_v37 = vpop.eup %766 }
 0x4f9   :  { %492 = vst [vmem:[#allocation9] sm:$0xff] %v767_v37  ;;  %v554_v39 = vsub.f32 %v767_v37, %v552_v36 }
 0x4fa   :  { %v769_v40 = vpop.eup %768 }
 0x4fb   :  { %493 = vst [vmem:[#allocation9 + $0x8] sm:$0xff] %v769_v40  ;;  %v555_v41 = vsub.f32 %v769_v40, %v553_v38  ;;  %v556_v42 = vand.u32 2147483647, %v554_v39 }
 0x4fd   :  { %v557_v43 = vand.u32 2147483647, %v555_v41  ;;  %v559_v44 = vsel %vm558_vm6, %v556_v42, 0.0 }
 0x4ff   :  { %v560_v45 = vsel %vm558_vm6, %v557_v43, 0.0 }
 0x500   :  { %v561_v46 = vadd.f32 %v560_v45, %v559_v44 }
 0x52c   :  { %v507_v47 = vpop.xlane.xlu1 %506 }
 0x52d   :  { %770 = vlog2.f32 %v507_v47 }
 0x52e   :  { %v509_v48 = vpop.xlane.xlu0 %508 }
 0x52f   :  { %772 = vlog2.f32 %v509_v48 }
 0x530   :  { %v533_v50 = vpop.xlane.xlu1 %532 }
 0x534   :  { %v535_v57 = vpop.xlane.xlu1 %534 }
 0x537   :  { %v771_v49 = vpop.eup %770 }
 0x538   :  { %v511_v51 = vmul.f32 0.6931472, %v771_v49 }
 0x539   :  { %v773_v52 = vpop.eup %772 }
 0x53a   :  { %v513_v53 = vmul.f32 0.6931472, %v773_v52  ;;  %v514_v54 = vadd.f32 %v511_v51, %v1148_v9  ;;  %v89_v9 = vadd.f32 %v88_v6, %v87_v5 }
 0x53c   :  { %v536_v55 = vsub.f32 %v514_v54, %v533_v50  ;;  %v515_v56 = vadd.f32 %v513_v53, %v1151_v11  ;;  %v90_v11 = vrot.slane %v89_v9, 4 }
 0x53e   :  { %v537_v58 = vsub.f32 %v515_v56, %v535_v57  ;;  %v539_v59 = vsel %vm538_vm7, %v536_v55, 0.0  ;;  %v91_v13 = vadd.f32 %v90_v11, %v89_v9 }
 0x540   :  { %v540_v60 = vsel %vm538_vm7, %v537_v58, 0.0  ;;  %v92_v15 = vrot.slane %v91_v13, 2 }
 0x541   :  { %v541_v61 = vadd.f32 %v540_v60, %v539_v59 }
 0x542   :  { %v93_v16 = vadd.f32 %v92_v15, %v91_v13 }
 0x543   :  { %542 = vadd.xlane.f32.xlu1 %v541_v61 }
 0x544   :  { %v94_v18 = vrot.slane %v93_v16, 1 }
 0x546   :  { %v95_v19 = vadd.f32 %v94_v18, %v93_v16 }
 0x547   :  { %562 = vadd.xlane.f32.xlu1 %v561_v46 }
 0x548   :  { %v105_v21 = vmul.f32 0.0625, %v95_v19 }
 0x54a   :  { %108 = vst.msk [vmem:[#allocation12] sm:$0x1] %vm107_vm8, %v105_v21 }
 0x54b   :  { %851 = shalt.err (!%p848_p0)
}
 0x54c   :  { %s852_s23 = scalar_lea.hbm %s1267_s9, 256 }
 0x54d   :  { %p853_p1 = scmp.ne.s32.totalorder %s1267_s9, %s852_s23  ;;  %p856_p2 = scmp.lt.u32.totalorder %s852_s23, %s1267_s9 }
 0x54f   :  { %p858_p3 = pnand %p856_p2, %p853_p1 }
 0x551   :  { %861 = shalt.err (!%p858_p3)
}
 0x552   :  { %s970_s29 = smov 128   ;;  %s971_s30 = smov 8  }
 0x553   :  { %598 = dma.vmem_to_hbm [thread:$0]  %s593_s20, 256, %s1267_s9, [#allocation10], %s970_s29, %s970_s29, %s971_s30  }
 0x554   :  { %s862_s14 = scalar_lea.vmem %s1175_s24, 32  ;;  %p867_p5 = scmp.lt.s32.totalorder %s1175_s24, %s1175_s24 }
 0x555   :  { %p863_p4 = scmp.ne.s32.totalorder %s1175_s24, %s862_s14  ;;  %p868_p6 = scmp.lt.s32.totalorder %s862_s14, %s862_s14 }
 0x557   :  { %p869_p7 = por %p868_p6, %p867_p5 }
 0x559   :  { %p870_p8 = pnand %p869_p7, %p863_p4 }
 0x55b   :  { %873 = shalt.err (!%p870_p8)
}
 0x55c   :  { %s874_s16 = scalar_lea.hbm %s1269_s11, 32 }
 0x55d   :  { %p875_p9 = scmp.ne.s32.totalorder %s1269_s11, %s874_s16  ;;  %p878_p10 = scmp.lt.u32.totalorder %s874_s16, %s1269_s11 }
 0x55f   :  { %p880_p11 = pnand %p878_p10, %p875_p9 }
 0x561   :  { %883 = shalt.err (!%p880_p11)
}
 0x562   :  { %s972_s9 = smov 16   ;;  %s973_s7 = smov 1  }
 0x563   :  { %622 = dma.vmem_to_hbm [thread:$0]  %s1175_s24, 32, %s1269_s11, [#allocation13], %s972_s9, %s972_s9, %s973_s7  }
 0x564   :  { %s974_s4 = smov [#allocation8]   ;;  %s975_s1 = smov [#allocation11]  }
 0x565   :  { %s580_s21 = sshll.u32 %s974_s4, 4  ;;  %s604_s23 = sshll.u32 %s975_s1, 4  ;;  %s581_s21 = int_to_ptr.vmem [resolvable:$true] %s580_s21  ;;  %s1209_s23 = int_to_ptr.vmem [resolvable:$true] %s604_s23 }
 0x566   :  { %s884_s25 = scalar_lea.vmem %s581_s21, 256  ;;  %p889_p13 = scmp.lt.s32.totalorder %s581_s21, %s581_s21 }
 0x567   :  { %p885_p12 = scmp.ne.s32.totalorder %s581_s21, %s884_s25  ;;  %p890_p0 = scmp.lt.s32.totalorder %s884_s25, %s884_s25 }
 0x569   :  { %p891_p1 = por %p890_p0, %p889_p13 }
 0x56b   :  { %p892_p2 = pnand %p891_p1, %p885_p12 }
 0x56d   :  { %895 = shalt.err (!%p892_p2)
}
 0x56e   :  { %s896_s28 = scalar_lea.hbm %s1266_s8, 256 }
 0x56f   :  { %p897_p3 = scmp.ne.s32.totalorder %s1266_s8, %s896_s28  ;;  %p900_p4 = scmp.lt.u32.totalorder %s896_s28, %s1266_s8 }
 0x571   :  { %p902_p5 = pnand %p900_p4, %p897_p3 }
 0x573   :  { %905 = shalt.err (!%p902_p5)
}
 0x574   :  { %586 = dma.vmem_to_hbm [thread:$0]  %s581_s21, 256, %s1266_s8, [#allocation4], %s970_s29, %s970_s29, %s971_s30  }
 0x575   :  { %s906_s6 = scalar_lea.vmem %s1209_s23, 128  ;;  %p911_p7 = scmp.lt.s32.totalorder %s1209_s23, %s1209_s23 }
 0x576   :  { %p907_p6 = scmp.ne.s32.totalorder %s1209_s23, %s906_s6  ;;  %p912_p8 = scmp.lt.s32.totalorder %s906_s6, %s906_s6 }
 0x578   :  { %p913_p9 = por %p912_p8, %p911_p7 }
 0x57a   :  { %p914_p10 = pnand %p913_p9, %p907_p6 }
 0x57c   :  { %917 = shalt.err (!%p914_p10)
}
 0x57d   :  { %s918_s18 = scalar_lea.hbm %s1268_s10, 128 }
 0x57e   :  { %p919_p11 = scmp.ne.s32.totalorder %s1268_s10, %s918_s18  ;;  %p922_p12 = scmp.lt.u32.totalorder %s918_s18, %s1268_s10 }
 0x580   :  { %p924_p13 = pnand %p922_p12, %p919_p11 }
 0x582   :  { %927 = shalt.err (!%p924_p13)
}
 0x583   :  { %610 = dma.vmem_to_hbm [thread:$0]  %s1209_s23, 128, %s1268_s10, [#allocation10], %s962_s3, %s962_s3, %s963_s22  }
 0x584   :  { %s976_s3 = smov [#allocation14]  }
 0x585   :  { %s629_s22 = sshll.u32 %s976_s3, 4  ;;  %s630_s22 = int_to_ptr.vmem [resolvable:$true] %s629_s22 }
 0x586   :  { %s928_s21 = scalar_lea.vmem %s630_s22, 16  ;;  %s932_s1 = scalar_lea.vmem %s630_s22, 32 }
 0x587   :  { %p929_p0 = scmp.ne.s32.totalorder %s630_s22, %s928_s21  ;;  %p933_p1 = scmp.lt.s32.totalorder %s630_s22, %s630_s22 }
 0x588   :  { %p934_p2 = scmp.lt.s32.totalorder %s932_s1, %s928_s21 }
 0x58a   :  { %p935_p3 = por %p934_p2, %p933_p1 }
 0x58c   :  { %p936_p4 = pnand %p935_p3, %p929_p0 }
 0x5d0   :  { %v543_v23 = vpop.xlane.xlu1 %542 }
 0x5d1   :  { %v544_v24 = vrot.slane %v543_v23, 4 }
 0x5d3   :  { %v545_v25 = vadd.f32 %v544_v24, %v543_v23 }
 0x5d4   :  { %v563_v26 = vpop.xlane.xlu1 %562 }
 0x5d5   :  { %v546_v27 = vrot.slane %v545_v25, 2  ;;  %v564_v28 = vrot.slane %v563_v26, 4 }
 0x5d7   :  { %v565_v29 = vadd.f32 %v564_v28, %v563_v26  ;;  %v547_v30 = vadd.f32 %v546_v27, %v545_v25 }
 0x5d9   :  { %v566_v31 = vrot.slane %v565_v29, 2  ;;  %v548_v32 = vrot.slane %v547_v30, 1 }
 0x5db   :  { %v567_v33 = vadd.f32 %v566_v31, %v565_v29  ;;  %v549_v34 = vadd.f32 %v548_v32, %v547_v30 }
 0x5dd   :  { %715 = vpush %v549_v34  ;;  %v568_v0 = vrot.slane %v567_v33, 1 }
 0x5df   :  { %v569_v35 = vadd.f32 %v568_v0, %v567_v33 }
 0x5e1   :  { %717 = vpush %v569_v35 }
 0x60e   :  { %s716_s30 = spop %715 }
 0x60f   :  { %s551_s20 = smul.f32 0.0625, %s716_s30 }
 0x612   :  { %s718_s0 = spop %717 }
 0x613   :  { %s571_s10 = smul.f32 0.16666667, %s718_s0 }
 0x615   :  { %s572_s4 = sadd.f32 %s571_s10, %s551_s20 }
 0x617   :  { %v573_v36 = vstv %s572_s4 }
 0x618   :  { %574 = vst [vmem:[#allocation14] sm:$0x1] %v573_v36 }
 0x619   :  { %939 = shalt.err (!%p936_p4)
}
 0x61a   :  { %s940_s26 = scalar_lea.hbm %s1270_s12, 16 }
 0x61b   :  { %p941_p5 = scmp.ne.s32.totalorder %s1270_s12, %s940_s26  ;;  %p944_p6 = scmp.lt.u32.totalorder %s940_s26, %s1270_s12 }
 0x61d   :  { %p946_p7 = pnand %p944_p6, %p941_p5 }
 0x61f   :  { %949 = shalt.err (!%p946_p7)
}
 0x620   :  { %632 = dma.vmem_to_hbm [thread:$0]  %s630_s22, 16, %s1270_s12, [#allocation13]  }
 0x621   :  { %954 = dma.done.wait [#allocation4], 256  }
 0x622   :  { %955 = vsyncadd [#allocation4], 4294967040 }
 0x623   :  { %956 = dma.done.wait [#allocation10], 384  }
 0x624   :  { %957 = vsyncadd [#allocation10], 4294966912 }
 0x625   :  { %958 = dma.done.wait [#allocation13], 48  }
 0x626   :  { %959 = vsyncadd [#allocation13], 4294967248 }
 0x627   :  { %648 = vsyncpa [#allocation3], 1 }
 0x628   :  { %649 = vsyncpa [#allocation6], 1 }
 0x629   :  { %650 = vsyncpa [#allocation4], 1 }
 0x62a   :  { %651 = vsyncpa [#allocation10], 1 }
 0x62b   :  { %652 = vsyncpa [#allocation13], 1 }

</bundles_post_ra>
